<compile_context>
chip_gen: v7x
topology: tpu7x:2x2x1
jax: 0.10.0
libtpu: 0.0.40
codegen_flags: <defaults>
</compile_context>

<pallas_src>
import math

import jax
import jax.numpy as jnp
from jax import lax
from jax.experimental import pallas as pl
from jax.experimental.pallas import tpu as pltpu

_LANE = 128
_SUB = 8
_MIN_PALLAS_VECS = 4096        # below this many 2-vectors, a pallas_call launch >> the work
_BLOCK_BYTES = 1 << 20         # ~1 MiB (f32) per pipelined block: on the HBM-roofline plateau
_MAX_WIDTH = 2048              # slab lane width (x/y interleaved), multiple of 128
_MIN_WIDTH = 256


def _make_ring_kernel(bin_sz: float, d: float, w: float, num_steps: int):
    cos_a = math.cos(w * bin_sz)
    sin_a = math.sin(w * bin_sz)
    decay = 1.0 - bin_sz
    gain = bin_sz * d
    r0 = bin_sz * d            # radius one step after starting exactly at the origin
    # After one guarded step r' >= bin_sz*d > 0 (for d>0, 0<bin_sz<=1), so the
    # zero-radius guard is only needed on step 0.  Keep it everywhere otherwise.
    guard_tail = not (d > 0.0 and 0.0 < bin_sz <= 1.0)

    def ring_kernel(z_ref, o_ref):
        # Block is (TR, W) with x in even lanes, y in odd lanes (interleaved).
        z = z_ref[...].astype(jnp.float32)
        width = z.shape[-1]

        # Hoisted per-lane constants (computed once per tile, reused every step).
        lane = lax.broadcasted_iota(jnp.int32, z.shape, dimension=z.ndim - 1)
        is_x = (lane & 1) == 0
        signed_sin = jnp.where(is_x, -sin_a, sin_a)            # rotation cross-term sign
        origin_out = jnp.where(is_x, r0 * cos_a, r0 * sin_a)   # exact-zero-state result

        def step(zz, guarded):
            # partner[i] = y for x-lanes, x for y-lanes (XLU rolls: free slots when HBM-bound)
            partner = jnp.where(is_x,
                                pltpu.roll(zz, shift=width - 1, axis=1),  # zz[i+1]
                                pltpu.roll(zz, shift=1, axis=1))          # zz[i-1]
            s = zz * zz + partner * partner
            if guarded:
                inv_r = lax.rsqrt(jnp.where(s > 0.0, s, 1.0))
            else:
                inv_r = lax.rsqrt(s)
            scale = decay + gain * inv_r                                   # r'/r
            out = scale * (zz * cos_a + partner * signed_sin)
            if guarded:
                out = jnp.where(s > 0.0, out, origin_out)
            return out

        z = step(z, guarded=True)                                          # step 0 (guarded)
        if num_steps > 1:
            # No unroll: each iteration is already a full multi-KiB tile; state
            # is carried in VMEM across steps (HBM traffic divided by num_steps).
            z = lax.fori_loop(1, num_steps,
                              lambda _, zz: step(zz, guard_tail), z)
        o_ref[...] = z.astype(o_ref.dtype)

    return ring_kernel


def _choose_layout(n2: int):
    """Lane-dense slab (rows, width) for n2 interleaved scalars -> (rows, width, tr, grid)."""
    width = _MAX_WIDTH
    while width > _MIN_WIDTH and n2 < _SUB * width:    # don't over-pad smaller inputs
        width //= 2
    rows = pl.cdiv(n2, width)                          # >= 8 on the Pallas path
    max_tr = max(_SUB, (_BLOCK_BYTES // (width * 4)) // _SUB * _SUB)
    tr = min(max_tr, (rows // _SUB) * _SUB)            # multiple of 8, <= rows
    tr = max(tr, _SUB)
    # Guarantee >= 2 row blocks when possible so "parallel" shards both v7x cores.
    if pl.cdiv(rows, tr) < 2 and rows >= 2 * _SUB:
        tr = max(_SUB, (rows // 2) // _SUB * _SUB)
    grid = pl.cdiv(rows, tr)                           # partial last block handled by Pallas
    return rows, width, tr, grid


def _fused_step_xla(z, *, bin_sz, d, w):
    """Fused XLA path (small inputs): identical f32 rsqrt/rotation math as the kernel."""
    cos_a = math.cos(w * bin_sz)
    sin_a = math.sin(w * bin_sz)
    decay = 1.0 - bin_sz
    gain = bin_sz * d
    r0 = bin_sz * d
    x = z[..., 0].astype(jnp.float32)
    y = z[..., 1].astype(jnp.float32)
    s = x * x + y * y
    nz = s > 0.0
    inv_r = lax.rsqrt(jnp.where(nz, s, 1.0))
    scale = decay + gain * inv_r
    nx = jnp.where(nz, scale * (x * cos_a - y * sin_a), r0 * cos_a)
    ny = jnp.where(nz, scale * (y * cos_a + x * sin_a), r0 * sin_a)
    return jnp.stack([nx, ny], axis=-1).astype(z.dtype)


def _reference(z, *, bin_sz=0.005, d=1.0, w=1.7):
    """Direct transcription of the PyTorch forward (validation only)."""
    z = z.astype(jnp.float32)
    r_t = jnp.sqrt(jnp.sum(z ** 2, axis=-1))[..., None]
    theta_t = jnp.arctan2(z[..., 1], z[..., 0])[..., None]
    r_tp1 = r_t + bin_sz * (d - r_t)
    theta_tp1 = theta_t + w * bin_sz
    return jnp.concatenate(
        [r_tp1 * jnp.cos(theta_tp1), r_tp1 * jnp.sin(theta_tp1)], axis=-1)


def ring_attractor_step(z, *, bin_sz=0.005, d=1.0, w=1.7, num_steps=1):
    """Apply `num_steps` ring-attractor updates to z of shape (..., 2)."""
    assert z.shape[-1] == 2, "state dim must be 2 (x, y)"
    assert num_steps >= 1
    lead = z.shape[:-1]
    n = math.prod(lead) if lead else 1

    # Size gate: launch/DMA-setup cost dwarfs tiny workloads -> fused XLA path.
    if n < _MIN_PALLAS_VECS:
        out = z
        for _ in range(num_steps):
            out = _fused_step_xla(out, bin_sz=bin_sz, d=d, w=w)
        return out

    n2 = 2 * n
    rows, width, tr, grid = _choose_layout(n2)

    # (..., 2) is x/y-interleaved and contiguous -> reshapes below are metadata-only.
    flat = z.reshape(n2)
    pad = rows * width - n2
    if pad:
        # TODO(synk): only hit when `width` doesn't divide 2*N; costs one extra copy pass.
        flat = jnp.pad(flat, (0, pad))
    slab = flat.reshape(rows, width)

    kernel = _make_ring_kernel(float(bin_sz), float(d), float(w), int(num_steps))
    itemsize = jnp.dtype(z.dtype).itemsize
    cost = pl.CostEstimate(
        flops=10 * num_steps * rows * width,
        transcendentals=num_steps * rows * width,
        bytes_accessed=2 * rows * width * itemsize,
    )

    out_slab = pl.pallas_call(
        kernel,
        out_shape=jax.ShapeDtypeStruct((rows, width), z.dtype),
        grid=(grid,),
        in_specs=[pl.BlockSpec((tr, width), lambda i: (i, 0))],
        out_specs=pl.BlockSpec((tr, width), lambda i: (i, 0)),
        compiler_params=pltpu.CompilerParams(
            dimension_semantics=("parallel",),
            vmem_limit_bytes=32 * 1024 * 1024,
        ),
        cost_estimate=cost,
    )(slab)

    out_flat = out_slab.reshape(rows * width)
    if pad:
        out_flat = out_flat[:n2]
    return out_flat.reshape(lead + (2,))


if __name__ == "__main__":
    key = jax.random.PRNGKey(0)
    k1, k2 = jax.random.split(key)

    # Tiny (batch, seq, 2) latents: size-gated fused-XLA path.
    z_small = jax.random.normal(k1, (2, 8, 2), dtype=jnp.float32)
    out_small = jax.block_until_ready(ring_attractor_step(z_small))
    assert out_small.shape == z_small.shape and out_small.dtype == z_small.dtype
    assert jnp.allclose(out_small, _reference(z_small), atol=1e-5, rtol=1e-5), \
        "small-path mismatch vs reference"

    # Larger batch*seq: Pallas path. N=16384 2-vectors -> slab (16, 2048),
    # two (8, 2048) row blocks (>=2 blocks so v7x megacore is used), no padding,
    # no wrapper transposes (all reshapes are metadata-only).
    z_big = jax.random.normal(k2, (32, 512, 2), dtype=jnp.float32)
    out_big = jax.block_until_ready(ring_attractor_step(z_big))
    assert out_big.shape == z_big.shape and out_big.dtype == z_big.dtype
    assert jnp.allclose(out_big, _reference(z_big), atol=1e-5, rtol=1e-5), \
        "pallas-path mismatch vs reference"

    # Fused multi-step: T dynamics updates in one kernel (state in VMEM,
    # zero-radius guard peeled after step 0).
    T = 4
    out_multi = jax.block_until_ready(ring_attractor_step(z_big, num_steps=T))
    ref_multi = z_big
    for _ in range(T):
        ref_multi = _reference(ref_multi)
    assert jnp.allclose(out_multi, ref_multi, atol=1e-5, rtol=1e-5), \
        "multi-step mismatch vs reference"

    print("KERNEL_OK")
</pallas_src>

<mosaic_0001>
module attributes {stable_mosaic.version = 11 : i64} {
  func.func @ring_kernel(%arg0: i32, %arg1: memref<8x2048xf32, #tpu.memory_space<vmem>>, %arg2: memref<8x2048xf32, #tpu.memory_space<vmem>>) attributes {dimension_semantics = [#tpu.dimension_semantics<parallel>], iteration_bounds = array<i64: 2>, scalar_prefetch = 0 : i64, scratch_operands = 0 : i64, tpu.core_type = #tpu.core_type<tc>, window_params = [{transform_indices = @transform_0, window_bounds = array<i64: 8, 2048>}, {transform_indices = @transform_1, window_bounds = array<i64: 8, 2048>}]} {
    %c0 = arith.constant 0 : index
    %c0_0 = arith.constant 0 : index
    %0 = vector.load %arg1[%c0, %c0_0] : memref<8x2048xf32, #tpu.memory_space<vmem>>, vector<8x2048xf32>
    %1 = tpu.iota {dimensions = array<i32: 1>} : vector<8x2048xi32>
    %c1_i32 = arith.constant 1 : i32
    %2 = vector.broadcast %c1_i32 : i32 to vector<8x2048xi32>
    %3 = arith.andi %1, %2 : vector<8x2048xi32>
    %c0_i32 = arith.constant 0 : i32
    %4 = vector.broadcast %c0_i32 : i32 to vector<8x2048xi32>
    %5 = arith.cmpi eq, %3, %4 : vector<8x2048xi32>
    %cst = arith.constant -0.00849989802 : f32
    %cst_1 = arith.constant 0.00849989802 : f32
    %6 = vector.broadcast %cst : f32 to vector<8x2048xf32>
    %7 = vector.broadcast %cst_1 : f32 to vector<8x2048xf32>
    %8 = arith.select %5, %6, %7 : vector<8x2048xi1>, vector<8x2048xf32>
    %cst_2 = arith.constant 0.00499981921 : f32
    %cst_3 = arith.constant 4.24994869E-5 : f32
    %9 = vector.broadcast %cst_2 : f32 to vector<8x2048xf32>
    %10 = vector.broadcast %cst_3 : f32 to vector<8x2048xf32>
    %11 = arith.select %5, %9, %10 : vector<8x2048xi1>, vector<8x2048xf32>
    %c2047_i32 = arith.constant 2047 : i32
    %12 = tpu.dynamic_rotate %0 by %c2047_i32 dim 1 : vector<8x2048xf32>, i32 -> vector<8x2048xf32>
    %c1_i32_4 = arith.constant 1 : i32
    %13 = tpu.dynamic_rotate %0 by %c1_i32_4 dim 1 : vector<8x2048xf32>, i32 -> vector<8x2048xf32>
    %14 = arith.select %5, %12, %13 : vector<8x2048xi1>, vector<8x2048xf32>
    %15 = arith.mulf %0, %0 : vector<8x2048xf32>
    %16 = arith.mulf %14, %14 : vector<8x2048xf32>
    %17 = arith.addf %15, %16 : vector<8x2048xf32>
    %cst_5 = arith.constant 0.000000e+00 : f32
    %18 = vector.broadcast %cst_5 : f32 to vector<8x2048xf32>
    %19 = arith.cmpf ogt, %17, %18 : vector<8x2048xf32>
    %cst_6 = arith.constant 1.000000e+00 : f32
    %20 = vector.broadcast %cst_6 : f32 to vector<8x2048xf32>
    %21 = arith.select %19, %17, %20 : vector<8x2048xi1>, vector<8x2048xf32>
    %22 = math.rsqrt %21 : vector<8x2048xf32>
    %cst_7 = arith.constant 5.000000e-03 : f32
    %23 = vector.broadcast %cst_7 : f32 to vector<8x2048xf32>
    %24 = arith.mulf %23, %22 : vector<8x2048xf32>
    %cst_8 = arith.constant 9.950000e-01 : f32
    %25 = vector.broadcast %cst_8 : f32 to vector<8x2048xf32>
    %26 = arith.addf %25, %24 : vector<8x2048xf32>
    %cst_9 = arith.constant 0.999963879 : f32
    %27 = vector.broadcast %cst_9 : f32 to vector<8x2048xf32>
    %28 = arith.mulf %0, %27 : vector<8x2048xf32>
    %29 = arith.mulf %14, %8 : vector<8x2048xf32>
    %30 = arith.addf %28, %29 : vector<8x2048xf32>
    %31 = arith.mulf %26, %30 : vector<8x2048xf32>
    %cst_10 = arith.constant 0.000000e+00 : f32
    %32 = vector.broadcast %cst_10 : f32 to vector<8x2048xf32>
    %33 = arith.cmpf ogt, %17, %32 : vector<8x2048xf32>
    %34 = arith.select %33, %31, %11 : vector<8x2048xi1>, vector<8x2048xf32>
    %c0_11 = arith.constant 0 : index
    %c0_12 = arith.constant 0 : index
    %35 = vector.load %arg2[%c0_11, %c0_12] : memref<8x2048xf32, #tpu.memory_space<vmem>>, vector<8x2048xf32>
    tpu.vector_store %arg2[%c0_11, %c0_12], %34 {strides = array<i32>} : memref<8x2048xf32, #tpu.memory_space<vmem>>, vector<8x2048xf32>,
    return
  }
  func.func @transform_0(%arg0: i32) -> (i32, i32) {
    %c0_i32 = arith.constant 0 : i32
    %c0_i32_0 = arith.constant 0 : i32
    return %arg0, %c0_i32 : i32, i32
  }
  func.func @transform_1(%arg0: i32) -> (i32, i32) {
    %c0_i32 = arith.constant 0 : i32
    %c0_i32_0 = arith.constant 0 : i32
    return %arg0, %c0_i32 : i32, i32
  }
}

</mosaic_0001>

<bundles_post_ra>
// kernel: tpu_custom_call.1
= control target key start
LH: loop header
LB: loop body
LE: loop exit
PB: predicated region body
PF: predicated region fallthrough
CT: control target
= control target key end

     0   :  { %6 = vsyncpa [#allocation3], 0  ;;  %s1814_s0 = inlined_call_operand.hbm [shape: f32[16,2048], index: 0, kind: input, shape index: {}]   ;;  %s1815_s1 = inlined_call_operand.hbm [shape: f32[16,2048], index: 1, kind: output, shape index: {}]  }
   0x1   :  { %8 = vsyncpa [#allocation3 + $0x1], 0 }
   0x2   :  { %9 = vsyncpa [#allocation4], 0 }
   0x3   :  { %11 = vsyncpa [#allocation4 + $0x1], 0  ;;  %s865_s6 = smov 0   ;;  %s867_s7 = smov 0  }
   0x4   :  { %s869_s8 = smov 0   ;;  %s871_s9 = smov 0  }
   0x5 LB: > { %s886_s10 = sadd.s32 4294967295, %s847_s9   ;;  %s653_s11 = sadd.s32 4294967294, %s847_s9   ;;  %s847_s9 = sphi %s871_s9, %s1955_s9   ;;  %s843_s8 = sphi %s869_s8, %s1954_s8   ;;  %s839_s7 = sphi %s867_s7, %s1953_s7   ;;  %s835_s6 = sphi %s865_s6, %s1952_s6  }
   0x6   : > { %s890_s12 = sadd.s32 1, %s847_s9   ;;  %s24_s13 = sadd.s32 1, %s843_s8 }
   0x7   : > { %s21_s14 = ssub.s32 %s847_s9, %s890_s12  ;;  %p31_p0 = scmp.ne.s32.totalorder %s843_s8, %s839_s7 }
   0x8   : > { %p22_p1 = scmp.eq.s32.totalorder %s21_s14, 0  ;;  %p32_p2 = scmp.eq.s32.totalorder %s847_s9, 0 }
   0x9   : > { %p37_p3 = scmp.ne.s32.totalorder %s839_s7, %s835_s6  ;;  %p38_p4 = scmp.eq.s32.totalorder %s886_s10, 0 }
   0xa   : > { %s902_s15 = scalar_select %p22_p1, %s843_s8, %s24_s13  }
   0xb   : > { %p904_p5 = por %p32_p2, %p31_p0  ;;  %p908_p6 = por %p38_p4, %p37_p3 }
   0xc   : > { %p61_p7 = scmp.eq.s32.totalorder %s886_s10, 1  ;;  %p67_p8 = scmp.eq.s32.totalorder %s653_s11, 1 }
   0xd   : > { %p681_p10 = scmp.lt.s32.totalorder %s847_s9, 2  ;;  %s87_s20 = sand.u32 1, %s843_s8  }
   0xe   : > { %p915_p11 = por %p61_p7, %p31_p0  ;;  %p919_p12 = por %p67_p8, %p37_p3 }
   0xf   : > { %s667_s21 = sshll.u32 %s847_s9, 11  ;;  %s656_s22 = sshll.u32 %s87_s20, 7 }
  0x10   : > { %s1833_s18 = scalar_select %p915_p11, 1, 0 }
  0x11   : > { %s1834_s19 = scalar_select %p919_p12, 1, 0 }
  0x12   : > { %s928_s25 = scalar_lea.hbm %s1814_s0, %s667_s21  ;;  %s91_s26 = scalar_lea.vmem [#allocation2], %s656_s22 }
  0x13   : > { %s99_s27 = sshll.u32 %s91_s26, 4  ;;  %p932_p13 = pnand %p681_p10, %p904_p5  ;;  %s936_s27 = int_to_ptr.vmem [resolvable:$true] %s99_s27 }
  0x14   : > { %s88_s29 = scalar_lea.sflag [#allocation3], %s87_s20  ;;  %s751_s30 = scalar_lea.hbm %s928_s25, 2048 }
  0x15   : > { %p752_p2 = scmp.ne.s32.totalorder %s928_s25, %s751_s30  ;;  %p753_p3 = pneg %p932_p13 }
  0x16   : > { %s756_s4 = scalar_lea.hbm %s1814_s0, 4096  ;;  %p757_p5 = scmp.lt.u32.totalorder %s928_s25, %s1814_s0 }
  0x17   : > { %p754_p4 = pnand %p753_p3, %p752_p2  ;;  %p758_p8 = scmp.lt.u32.totalorder %s756_s4, %s751_s30 }
  0x18   : > { %p760_p9 = scmp.lt.u32.totalorder %s751_s30, %s928_s25 }
  0x19   : > { %p755_p7 = pneg %p754_p4  ;;  %p759_p10 = por %p758_p8, %p757_p5 }
  0x1b   : > { %p761_p0 = por %p760_p9, %p759_p10 }
  0x1d   : > { %p762_p1 = pnand %p761_p0, %p755_p7 }
  0x1f   : > { %765 = shalt.err (!%p762_p1)
}
  0x20   : > { %s766_s13 = scalar_lea.vmem %s936_s27, 2048  ;;  %s849_s14 = smov [#allocation2]  }
  0x21   : > { %p767_p2 = scmp.ne.s32.totalorder %s936_s27, %s766_s13  ;;  %s771_s16 = sshll.u32 %s849_s14, 4  ;;  %s772_s16 = int_to_ptr.vmem [resolvable:$false] %s771_s16 }
  0x22   : > { %s773_s20 = scalar_lea.vmem %s772_s16, 4096  ;;  %p774_p11 = scmp.lt.s32.totalorder %s936_s27, %s772_s16 }
  0x23   : > { %p769_p4 = pnand %p767_p2, %p753_p3  ;;  %p775_p5 = scmp.lt.s32.totalorder %s773_s20, %s766_s13 }
  0x25   : > { %p770_p12 = pneg %p769_p4  ;;  %p776_p8 = por %p775_p5, %p774_p11 }
  0x27   : > { %p777_p9 = pnand %p776_p8, %p770_p12 }
  0x29   : > { %780 = shalt.err (!%p777_p9)
}
  0x2a   : > { %676 = dma.hbm_to_vmem [thread:$0]  (!%p932_p13), %s928_s25, 2048, %s936_s27, %s88_s29  }
  0x2b   : > { %p1836_p0 = scmp.lt.s32.totalorder %s847_s9, 3  ;;  %p1837_p1 = scmp.ge.s32.totalorder %s847_s9, 1 }
  0x2d   : > { %p105_p3 = pnand %p1837_p1, %p1836_p0 }
  0x2f   : > { %108 = sbr.rel (%p105_p3) target bundleno = 291 (0x123), region = 24 }
  0x36   : > { %s970_s21 = sand.u32 1, %s839_s7  }
  0x37   : > { %s660_s22 = sshll.u32 %s970_s21, 7  ;;  %s111_s23 = scalar_lea.sflag [#allocation3], %s970_s21 }
  0x38   : > { %s976_s24 = scalar_lea.vmem [#allocation2], %s660_s22 }
  0x39   : > { %826 = dma.done.wait (%p908_p6), %s111_s23, 2048  }
  0x3a   : > { %828 = vsyncadd (%p908_p6), %s111_s23, 4294965248  ;;  %v135_v0 = vld [vmem:[%s976_s24 + $0x10] sm:$0xff]  ;;  %v133_v1 = vld [vmem:[%s976_s24] sm:$0xff]  ;;  %s850_s25 = smov 127   ;;  %s851_s17 = smov 1   ;;  %v149_v16 = vlaneseq }
  0x3b   : > { %234 = vrot.lane.b32.xlu1 %v135_v0, %s850_s25  ;;  %230 = vrot.lane.b32.xlu0 %v133_v1, %s850_s25  ;;  %v136_v2 = vld [vmem:[%s976_s24 + $0x18] sm:$0xff]  ;;  %v134_v3 = vld [vmem:[%s976_s24 + $0x8] sm:$0xff]  ;;  %v1055_v25 = vmul.f32 %v135_v0, %v135_v0  ;;  %v1057_v26 = vmul.f32 0.9999639, %v135_v0  ;;  %v1059_v27 = vmul.f32 %v133_v1, %v133_v1  ;;  %v1061_v28 = vmul.f32 0.9999639, %v133_v1 }
  0x3c   : > { %v138_v4 = vld [vmem:[%s976_s24 + $0x28] sm:$0xff]  ;;  %v137_v5 = vld [vmem:[%s976_s24 + $0x20] sm:$0xff]  ;;  %v140_v6 = vld [vmem:[%s976_s24 + $0x38] sm:$0xff]  ;;  %v1034_v17 = vand.u32 127, %v149_v16  ;;  %v1063_v29 = vmul.f32 %v136_v2, %v136_v2  ;;  %v1065_v30 = vmul.f32 0.9999639, %v136_v2  ;;  %v1067_v31 = vmul.f32 %v134_v3, %v134_v3 }
  0x3d   : > { %v990_v7 = vld [vmem:[%s976_s24 + $0x30] sm:$0xff]  ;;  %v994_v8 = vld [vmem:[%s976_s24 + $0x48] sm:$0xff]  ;;  %v997_v9 = vld [vmem:[%s976_s24 + $0x40] sm:$0xff]  ;;  %1842 = vst [vmem:[#allocation12_spill] sm:$0xff] %v1059_v27  ;;  %v1069_v32 = vmul.f32 0.9999639, %v134_v3  ;;  %v1071_v33 = vmul.f32 %v138_v4, %v138_v4  ;;  %v1075_v35 = vmul.f32 %v137_v5, %v137_v5  ;;  %v1083_v39 = vmul.f32 %v140_v6, %v140_v6 }
  0x3e   : > { %v1002_v10 = vld [vmem:[%s976_s24 + $0x58] sm:$0xff]  ;;  %v1005_v11 = vld [vmem:[%s976_s24 + $0x50] sm:$0xff]  ;;  %v1010_v12 = vld [vmem:[%s976_s24 + $0x68] sm:$0xff]  ;;  %vm262_vm0 = vcmp.lt.s32.totalorder %v1034_v17, 127  ;;  %1843 = vst [vmem:[#allocation13_spill] sm:$0xff] %v1061_v28  ;;  %v1089_v41 = vmul.f32 %v990_v7, %v990_v7  ;;  %v151_v42 = vadd.s32 128, %v1034_v17  ;;  %v1097_v44 = vmul.f32 %v994_v8, %v994_v8 }
  0x3f   : > { %236 = vrot.lane.b32.xlu1 %v136_v2, %s850_s25  ;;  %232 = vrot.lane.b32.xlu0 %v134_v3, %s850_s25  ;;  %1838 = vst [vmem:[#allocation8_spill] sm:$0xff] %v1010_v12  ;;  %v1013_v13 = vld [vmem:[%s976_s24 + $0x60] sm:$0xff]  ;;  %v1018_v14 = vld [vmem:[%s976_s24 + $0x78] sm:$0xff]  ;;  %v1073_v34 = vmul.f32 0.9999639, %v138_v4  ;;  %v152_v45 = vadd.s32 256, %v1034_v17  ;;  %v1106_v48 = vmul.f32 %v997_v9, %v997_v9  ;;  %v1115_v52 = vmul.f32 %v1002_v10, %v1002_v10 }
  0x40   : > { %1839 = vst [vmem:[#allocation9_spill] sm:$0xff] %v1013_v13  ;;  %v1021_v15 = vld [vmem:[%s976_s24 + $0x70] sm:$0xff]  ;;  %v1077_v36 = vmul.f32 0.9999639, %v137_v5  ;;  %v1085_v40 = vmul.f32 0.9999639, %v140_v6  ;;  %v1122_v54 = vmul.f32 %v1005_v11, %v1005_v11 }
  0x41   : > { %1840 = vst [vmem:[#allocation10_spill] sm:$0xff] %v1021_v15  ;;  %v1093_v43 = vmul.f32 0.9999639, %v990_v7  ;;  %v153_v46 = vadd.s32 384, %v1034_v17  ;;  %v1102_v47 = vmul.f32 0.9999639, %v994_v8 }
  0x42   : > { %1844 = vst [vmem:[#allocation14_spill] sm:$0xff] %v1085_v40  ;;  %v154_v49 = vadd.s32 512, %v1034_v17  ;;  %v155_v50 = vadd.s32 640, %v1034_v17  ;;  %v1111_v51 = vmul.f32 0.9999639, %v997_v9  ;;  %1847 = vst [vmem:[#allocation17_spill] sm:$0xff] %v1115_v52  ;;  %v1270_v52 = vmul.f32 %v1021_v15, %v1021_v15 }
  0x43   : > { %240 = vrot.lane.b32.xlu1 %v138_v4, %s850_s25  ;;  %238 = vrot.lane.b32.xlu0 %v137_v5, %s850_s25  ;;  %1845 = vst [vmem:[#allocation15_spill] sm:$0xff] %v1102_v47  ;;  %v1118_v53 = vmul.f32 0.9999639, %v1002_v10  ;;  %1849 = vst [vmem:[#allocation19_spill] sm:$0xff] %v1122_v54  ;;  %v1129_v57 = vmul.f32 0.9999639, %v1005_v11 }
  0x44   : > { %1846 = vst [vmem:[#allocation16_spill] sm:$0xff] %v1111_v51  ;;  %v167_v58 = vand.u32 1, %v151_v42  ;;  %v156_v59 = vadd.s32 768, %v1034_v17  ;;  %v157_v60 = vadd.s32 896, %v1034_v17  ;;  %v168_v61 = vand.u32 1, %v152_v45  ;;  %1882 = vst [vmem:[#allocation29_spill] sm:$0xff] %v1270_v52 }
  0x45   : > { %1848 = vst [vmem:[#allocation18_spill] sm:$0xff] %v1118_v53  ;;  %1850 = vst [vmem:[#allocation20_spill] sm:$0xff] %v1129_v57  ;;  %v169_v62 = vand.u32 1, %v153_v46  ;;  %v158_v63 = vadd.s32 1024, %v1034_v17  ;;  %v1876_v28 = vmov 0  ;;  %v1236_v27 = vadd.s32 1536, %v1034_v17 }
  0x46   : > { %vm1152_vm1 = vcmp.eq.s32.totalorder %v167_v58, 0  ;;  %v173_v16 = vand.u32 1, %v157_v60  ;;  %vm1156_vm2 = vcmp.eq.s32.totalorder %v168_v61, 0  ;;  %v1174_v61 = vmul.f32 %v1018_v14, %v1018_v14  ;;  %s1564_s26 = scalar_lea.vmem [#allocation5], %s660_s22  ;;  %s668_s27 = sshll.u32 %s886_s10, 11 }
  0x47   : > { %244 = vrot.lane.b32.xlu1 %v140_v6, %s850_s25  ;;  %242 = vrot.lane.b32.xlu0 %v990_v7, %s850_s25  ;;  %vm1160_vm3 = vcmp.eq.s32.totalorder %v169_v62, 0  ;;  %v174_v46 = vand.u32 1, %v158_v63  ;;  %v1821_v63 = vmov 0.008499898   ;;  %vm311_vm12 = vcmp.lt.s32.totalorder %v1034_v17, 1  ;;  %s583_s28 = sshll.u32 %s1564_s26, 4  ;;  %s1767_s2 = scalar_lea.hbm %s1815_s1, %s668_s27  ;;  %s1769_s28 = int_to_ptr.vmem [resolvable:$true] %s583_s28 }
  0x48   : > { %1864 = vst [vmem:[#allocation24_spill] sm:$0xff] %v1174_v61  ;;  %vm1205_vm7 = vcmp.eq.s32.totalorder %v173_v16, 0  ;;  %v1266_v51 = vadd.s32 1792, %v1034_v17  ;;  %s569_s10 = scalar_lea.sflag [#allocation4], %s970_s21  ;;  %s781_s3 = scalar_lea.vmem %s1769_s28, 2048 }
  0x49   : > { %vm1219_vm8 = vcmp.eq.s32.totalorder %v174_v46, 0  ;;  %v166_v46 = vand.u32 1, %v1034_v17  ;;  %p782_p6 = scmp.ne.s32.totalorder %s1769_s28, %s781_s3  ;;  %p1949_p11 = scmp.ne.s32.totalorder %s1833_s18, 0 }
  0x4a   : > { %s854_s4 = smov [#allocation5]  }
  0x4b   : > { %248 = vrot.lane.b32.xlu1 %v994_v8, %s850_s25  ;;  %246 = vrot.lane.b32.xlu0 %v997_v9, %s850_s25  ;;  %vm1298_vm13 = vcmp.eq.s32.totalorder %v166_v46, 0  ;;  %v1894_v46 = vmov 0  ;;  %p783_p12 = pnand %p782_p6, %p1949_p11  ;;  %s785_s5 = sshll.u32 %s854_s4, 4  ;;  %s786_s5 = int_to_ptr.vmem [resolvable:$false] %s785_s5 }
  0x4c   : > { %s787_s11 = scalar_lea.vmem %s786_s5, 4096  ;;  %p788_p7 = scmp.lt.s32.totalorder %s1769_s28, %s786_s5 }
  0x4d   : > { %p784_p13 = pneg %p783_p12  ;;  %p789_p10 = scmp.lt.s32.totalorder %s787_s11, %s781_s3 }
  0x4f   : > { %252 = vrot.lane.b32.xlu1 %v1002_v10, %s850_s25  ;;  %250 = vrot.lane.b32.xlu0 %v1005_v11, %s850_s25  ;;  %p790_p2 = por %p789_p10, %p788_p7 }
  0x51   : > { %p791_p4 = pnand %p790_p2, %p784_p13 }
  0x53   : > { %256 = vrot.lane.b32.xlu1 %v1010_v12, %s850_s25  ;;  %254 = vrot.lane.b32.xlu0 %v1013_v13, %s850_s25 }
  0x57   : > { %260 = vrot.lane.b32.xlu1 %v1018_v14, %s850_s25  ;;  %258 = vrot.lane.b32.xlu0 %v1021_v15, %s850_s25 }
  0x5b   : > { %281 = vrot.lane.b32.xlu1 %v134_v3, %s851_s17  ;;  %279 = vrot.lane.b32.xlu0 %v133_v1, %s851_s17  ;;  %v170_v1 = vand.u32 1, %v154_v49  ;;  %v160_v3 = vadd.s32 1280, %v1034_v17 }
  0x5d   : > { %vm1164_vm4 = vcmp.eq.s32.totalorder %v170_v1, 0  ;;  %v1819_v1 = vmov 4.2499487e-05  }
  0x5f   : > { %285 = vrot.lane.b32.xlu1 %v136_v2, %s851_s17  ;;  %283 = vrot.lane.b32.xlu0 %v135_v0, %s851_s17  ;;  %v159_v0 = vadd.s32 1152, %v1034_v17  ;;  %v171_v2 = vand.u32 1, %v155_v50 }
  0x61   : > { %v175_v49 = vand.u32 1, %v159_v0  ;;  %vm1168_vm5 = vcmp.eq.s32.totalorder %v171_v2, 0  ;;  %v1183_v0 = vsel %vm1152_vm1, -0.008499898, %v1821_v63  ;;  %v1188_v2 = vsel %vm1152_vm1, 0.004999819, %v1819_v1 }
  0x62   : > { %1865 = vst [vmem:[#allocation25_spill] sm:$0xff] %v1188_v2  ;;  %v1212_v1 = vsel %vm1164_vm4, -0.008499898, %v1821_v63  ;;  %v1217_v61 = vsel %vm1168_vm5, -0.008499898, %v1821_v63 }
  0x63   : > { %289 = vrot.lane.b32.xlu1 %v138_v4, %s851_s17  ;;  %287 = vrot.lane.b32.xlu0 %v137_v5, %s851_s17  ;;  %v161_v4 = vadd.s32 1408, %v1034_v17  ;;  %v1139_v5 = vmul.f32 %v1010_v12, %v1010_v12  ;;  %vm1223_vm9 = vcmp.eq.s32.totalorder %v175_v49, 0  ;;  %v1879_v49 = vmov 0.008499898  }
  0x64   : > { %v1263_v47 = vsel %vm1223_vm9, -0.008499898, %v1879_v49 }
  0x65   : > { %1851 = vst [vmem:[#allocation21_spill] sm:$0xff] %v1139_v5  ;;  %v177_v60 = vand.u32 1, %v161_v4  ;;  %v1199_v4 = vsel %vm1160_vm3, -0.008499898, %v1821_v63  ;;  %1881 = vst [vmem:[#allocation28_spill] sm:$0xff] %v1263_v47 }
  0x67   : > { %293 = vrot.lane.b32.xlu1 %v140_v6, %s851_s17  ;;  %291 = vrot.lane.b32.xlu0 %v990_v7, %s851_s17  ;;  %v1143_v6 = vmul.f32 %v1013_v13, %v1013_v13  ;;  %v1146_v7 = vmul.f32 0.9999639, %v1018_v14  ;;  %vm1231_vm11 = vcmp.eq.s32.totalorder %v177_v60, 0  ;;  %v1252_v60 = vadd.s32 1664, %v1034_v17 }
  0x68   : > { %v1877_v28 = vsel %vm1231_vm11, 4294967295, %v1876_v28  ;;  %v1285_v47 = vsel %vm1231_vm11, -0.008499898, %v1879_v49 }
  0x69   : > { %1852 = vst [vmem:[#allocation22_spill] sm:$0xff] %v1143_v6  ;;  %1853 = vst [vmem:[#allocation23_spill] sm:$0xff] %v1146_v7  ;;  %v1258_v6 = vsel %vm1219_vm8, -0.008499898, %v1879_v49 }
  0x6a   : > { %1878 = vst [vmem:[#allocation26_spill] sm:$0xff] %v1877_v28  ;;  %1880 = vst [vmem:[#allocation27_spill] sm:$0xff] %v1258_v6 }
  0x6b   : > { %297 = vrot.lane.b32.xlu1 %v994_v8, %s851_s17  ;;  %295 = vrot.lane.b32.xlu0 %v997_v9, %s851_s17  ;;  %1886 = vst [vmem:[#allocation32_spill] sm:$0xff] %v1285_v47 }
  0x6f   : > { %301 = vrot.lane.b32.xlu1 %v1002_v10, %s851_s17  ;;  %299 = vrot.lane.b32.xlu0 %v1005_v11, %s851_s17  ;;  %v172_v11 = vand.u32 1, %v156_v59  ;;  %v176_v59 = vand.u32 1, %v160_v3  ;;  %v165_v3 = vadd.s32 1920, %v1034_v17 }
  0x71   : > { %vm1201_vm6 = vcmp.eq.s32.totalorder %v172_v11, 0  ;;  %vm1227_vm10 = vcmp.eq.s32.totalorder %v176_v59, 0  ;;  %v1249_v59 = vsel %vm1205_vm7, -0.008499898, %v1879_v49  ;;  %v181_v5 = vand.u32 1, %v165_v3 }
  0x72   : > { %v1244_v57 = vsel %vm1201_vm6, -0.008499898, %v1879_v49  ;;  %v1883_v3 = vmov 4.2499487e-05   ;;  %v1280_v6 = vsel %vm1227_vm10, -0.008499898, %v1879_v49 }
  0x73   : > { %305 = vrot.lane.b32.xlu1 %v1010_v12, %s851_s17  ;;  %303 = vrot.lane.b32.xlu0 %v1013_v13, %s851_s17  ;;  %v1275_v54 = vsel %vm1156_vm2, 0.004999819, %v1883_v3  ;;  %1885 = vst [vmem:[#allocation31_spill] sm:$0xff] %v1280_v6  ;;  %v1295_v52 = vsel %vm1164_vm4, 0.004999819, %v1883_v3  ;;  %vm1315_vm14 = vcmp.eq.s32.totalorder %v181_v5, 0 }
  0x74   : > { %1884 = vst [vmem:[#allocation30_spill] sm:$0xff] %v1275_v54  ;;  %1888 = vst [vmem:[#allocation34_spill] sm:$0xff] %v1295_v52  ;;  %v1307_v47 = vsel %vm1168_vm5, 0.004999819, %v1883_v3  ;;  %v1895_v46 = vsel %vm1315_vm14, 4294967295, %v1894_v46 }
  0x75   : > { %1892 = vst [vmem:[#allocation36_spill] sm:$0xff] %v1307_v47  ;;  %1896 = vst [vmem:[#allocation38_spill] sm:$0xff] %v1895_v46  ;;  %v1329_v2 = vsel %vm1205_vm7, 0.004999819, %v1883_v3  ;;  %v1356_v10 = vsel %vm1227_vm10, 0.004999819, %v1883_v3 }
  0x76   : > { %1899 = vst [vmem:[#allocation41_spill] sm:$0xff] %v1356_v10  ;;  %v1361_v52 = vsel %vm1315_vm14, -0.008499898, %v1879_v49 }
  0x77   : > { %309 = vrot.lane.b32.xlu1 %v1018_v14, %s851_s17  ;;  %307 = vrot.lane.b32.xlu0 %v1021_v15, %s851_s17  ;;  %v1194_v14 = vsel %vm1156_vm2, -0.008499898, %v1821_v63  ;;  %v1290_v15 = vsel %vm1160_vm3, 0.004999819, %v1883_v3  ;;  %1900 = vst [vmem:[#allocation42_spill] sm:$0xff] %v1361_v52 }
  0x78   : > { %1887 = vst [vmem:[#allocation33_spill] sm:$0xff] %v1290_v15  ;;  %v1312_v15 = vsel %vm1201_vm6, 0.004999819, %v1883_v3 }
  0x79   : > { %1893 = vst [vmem:[#allocation37_spill] sm:$0xff] %v1312_v15  ;;  %v1337_v15 = vsel %vm1219_vm8, 0.004999819, %v1883_v3 }
  0x7a   : > { %1897 = vst [vmem:[#allocation39_spill] sm:$0xff] %v1337_v15 }
  0xad   : > { %v1036_v18 = vpop.permute.xlu1 %234  ;;  %v1038_v19 = vpop.permute.xlu0 %230 }
  0xb1   : > { %v1041_v20 = vpop.permute.xlu1 %236  ;;  %v1043_v21 = vpop.permute.xlu0 %232 }
  0xb2   : > { %v1049_v22 = vsel %vm262_vm0, %v1038_v19, %v1043_v21  ;;  %v276_v54 = vsel %vm262_vm0, %v1043_v21, %v1036_v18  ;;  %v1342_v21 = vsel %vm1223_vm9, 0.004999819, %v1883_v3 }
  0xb3   : > { %1841 = vst [vmem:[#allocation11_spill] sm:$0xff] %v1049_v22  ;;  %1898 = vst [vmem:[#allocation40_spill] sm:$0xff] %v1342_v21 }
  0xb5   : > { %v1051_v23 = vpop.permute.xlu1 %240  ;;  %v1053_v24 = vpop.permute.xlu0 %238 }
  0xb6   : > { %v273_v21 = vsel %vm262_vm0, %v1053_v24, %v1051_v23 }
  0xb9   : > { %v1079_v37 = vpop.permute.xlu1 %244  ;;  %v1081_v38 = vpop.permute.xlu0 %242 }
  0xba   : > { %v271_v10 = vsel %vm262_vm0, %v1081_v38, %v1079_v37 }
  0xbd   : > { %v1124_v55 = vpop.permute.xlu1 %248  ;;  %v1126_v56 = vpop.permute.xlu0 %246 }
  0xbe   : > { %v1383_v46 = vsel %vm262_vm0, %v1126_v56, %v1124_v55 }
  0xc1   : > { %v1148_v8 = vpop.permute.xlu1 %252  ;;  %v1150_v9 = vpop.permute.xlu0 %250 }
  0xc5   : > { %v1176_v62 = vpop.permute.xlu1 %256  ;;  %v1178_v12 = vpop.permute.xlu0 %254 }
  0xc9   : > { %v261_v63 = vpop.permute.xlu1 %260  ;;  %v1239_v22 = vpop.permute.xlu0 %258 }
  0xca   : > { %v1466_v50 = vsel %vm262_vm0, %v1176_v62, %v1239_v22 }
  0xcd   : > { %v282_v6 = vpop.permute.xlu1 %281  ;;  %v1302_v28 = vpop.permute.xlu0 %279 }
  0xce   : > { %1891 = vst [vmem:[#allocation35_spill] sm:$0xff] %v1302_v28  ;;  %v326_v47 = vsel %vm311_vm12, %v1302_v28, %v282_v6  ;;  %v1347_v28 = vsel %vm1298_vm13, -0.008499898, %v1879_v49  ;;  %v272_v49 = vsel %vm262_vm0, %v1051_v23, %v1081_v38  ;;  %v270_v23 = vsel %vm262_vm0, %v1079_v37, %v1126_v56 }
  0xcf   : > { %v329_v5 = vsel %vm1152_vm1, %v276_v54, %v326_v47  ;;  %v275_v47 = vsel %vm262_vm0, %v1036_v18, %v1041_v20  ;;  %v274_v18 = vsel %vm262_vm0, %v1041_v20, %v1053_v24  ;;  %v1400_v38 = vsel %vm262_vm0, %v1150_v9, %v1148_v8 }
  0xd0   : > { %v361_v54 = vmul.f32 %v329_v5, %v329_v5 }
  0xd1   : > { %v286_v3 = vpop.permute.xlu1 %285  ;;  %v284_v52 = vpop.permute.xlu0 %283 }
  0xd2   : > { %v1386_v20 = vadd.f32 %v361_v54, %v1067_v31  ;;  %v324_v24 = vsel %vm311_vm12, %v284_v52, %v286_v3  ;;  %v325_v15 = vsel %vm311_vm12, %v282_v6, %v284_v52  ;;  %v1410_v52 = vsel %vm262_vm0, %v1124_v55, %v1150_v9 }
  0xd3   : > { %v330_v31 = vsel %vm1156_vm2, %v275_v47, %v325_v15  ;;  %v331_v54 = vsel %vm1160_vm3, %v274_v18, %v324_v24  ;;  %v1417_v6 = vsel %vm262_vm0, %v1178_v12, %v1176_v62  ;;  %v1423_v15 = vsel %vm262_vm0, %v1148_v8, %v1178_v12 }
  0xd4   : > { %vm393_vm15 = vcmp.gt.f32.partialorder %v1386_v20, 0.0  ;;  %v362_v37 = vmul.f32 %v330_v31, %v330_v31  ;;  %v363_v56 = vmul.f32 %v331_v54, %v331_v54  ;;  %v1428_v55 = vsel %vm262_vm0, %v261_v63, %v1038_v19 }
  0xd5   : > { %1901 = vst [vmem:[#allocation43_spill] sm:$0xff] %v1428_v55  ;;  %v409_v9 = vsel %vm393_vm15, %v1386_v20, 1.0  ;;  %v290_v42 = vpop.permute.xlu1 %289  ;;  %v288_v45 = vpop.permute.xlu0 %287  ;;  %v1436_v47 = vsel %vm262_vm0, %v1239_v22, %v261_v63  ;;  %v489_v19 = vmul.f32 %v329_v5, %v1183_v0  ;;  %v490_v18 = vmul.f32 %v330_v31, %v1194_v14 }
  0xd6   : > { %719 = vrsqrt.f32 %v409_v9  ;;  %v1439_v12 = vadd.f32 %v362_v37, %v1055_v25  ;;  %v1442_v8 = vadd.f32 %v363_v56, %v1063_v29  ;;  %v322_v24 = vsel %vm311_vm12, %v288_v45, %v290_v42 }
  0xd7   : > { %v323_v55 = vsel %vm311_vm12, %v286_v3, %v288_v45  ;;  %v333_v29 = vsel %vm1168_vm5, %v272_v49, %v322_v24  ;;  %v491_v58 = vmul.f32 %v331_v54, %v1199_v4  ;;  %v1481_v22 = vadd.f32 %v490_v18, %v1057_v26 }
  0xd8   : > { %vm394_vm1 = vcmp.gt.f32.partialorder %v1439_v12, 0.0  ;;  %vm395_vm2 = vcmp.gt.f32.partialorder %v1442_v8, 0.0  ;;  %v332_v25 = vsel %vm1164_vm4, %v273_v21, %v323_v55  ;;  %v365_v3 = vmul.f32 %v333_v29, %v333_v29 }
  0xd9   : > { %v410_v63 = vsel %vm394_vm1, %v1439_v12, 1.0  ;;  %v411_v0 = vsel %vm395_vm2, %v1442_v8, 1.0  ;;  %v364_v14 = vmul.f32 %v332_v25, %v332_v25  ;;  %v294_v5 = vpop.permute.xlu1 %293  ;;  %v292_v31 = vpop.permute.xlu0 %291  ;;  %v505_v55 = vadd.f32 %v489_v19, %v1069_v32 }
  0xda   : > { %721 = vrsqrt.f32 %v410_v63  ;;  %v320_v49 = vsel %vm311_vm12, %v292_v31, %v294_v5  ;;  %v1475_v37 = vadd.f32 %v365_v3, %v1071_v33  ;;  %v321_v56 = vsel %vm311_vm12, %v290_v42, %v292_v31 }
  0xdb   : > { %723 = vrsqrt.f32 %v411_v0  ;;  %v1472_v21 = vadd.f32 %v364_v14, %v1075_v35  ;;  %v334_v62 = vsel %vm1201_vm6, %v271_v10, %v321_v56  ;;  %v335_v4 = vsel %vm1205_vm7, %v270_v23, %v320_v49  ;;  %v1948_v56 = vld [vmem:[#allocation10_spill] sm:$0xff] }
  0xdc   : > { %vm397_vm3 = vcmp.gt.f32.partialorder %v1475_v37, 0.0  ;;  %v366_v33 = vmul.f32 %v334_v62, %v334_v62  ;;  %v367_v35 = vmul.f32 %v335_v4, %v335_v4  ;;  %v507_v42 = vadd.f32 %v491_v58, %v1065_v30 }
  0xdd   : > { %vm396_vm0 = vcmp.gt.f32.partialorder %v1472_v21, 0.0  ;;  %v298_v54 = vpop.permute.xlu1 %297  ;;  %v296_v9 = vpop.permute.xlu0 %295  ;;  %v413_v13 = vsel %vm397_vm3, %v1475_v37, 1.0  ;;  %v492_v32 = vmul.f32 %v332_v25, %v1212_v1  ;;  %v493_v45 = vmul.f32 %v333_v29, %v1217_v61 }
  0xde   : > { %v412_v26 = vsel %vm396_vm0, %v1472_v21, 1.0  ;;  %v1498_v7 = vadd.f32 %v366_v33, %v1089_v41  ;;  %v1501_v10 = vadd.f32 %v367_v35, %v1083_v39  ;;  %v318_v30 = vsel %vm311_vm12, %v296_v9, %v298_v54 }
  0xdf   : > { %725 = vrsqrt.f32 %v412_v26  ;;  %v494_v19 = vmul.f32 %v334_v62, %v1244_v57  ;;  %v319_v18 = vsel %vm311_vm12, %v294_v5, %v296_v9  ;;  %v337_v61 = vsel %vm1223_vm9, %v1410_v52, %v318_v30 }
  0xe0   : > { %v720_v23 = vpop.eup %719  ;;  %727 = vrsqrt.f32 %v413_v13  ;;  %vm398_vm4 = vcmp.gt.f32.partialorder %v1498_v7, 0.0  ;;  %vm399_vm5 = vcmp.gt.f32.partialorder %v1501_v10, 0.0  ;;  %v336_v39 = vsel %vm1219_vm8, %v1383_v46, %v319_v18 }
  0xe1   : > { %v441_v1 = vmul.f32 0.005, %v720_v23  ;;  %v414_v41 = vsel %vm398_vm4, %v1498_v7, 1.0  ;;  %v415_v57 = vsel %vm399_vm5, %v1501_v10, 1.0  ;;  %v368_v24 = vmul.f32 %v336_v39, %v336_v39  ;;  %v1524_v53 = vpop.permute.xlu1 %301  ;;  %v300_v46 = vpop.permute.xlu0 %299 }
  0xe2   : > { %v508_v29 = vadd.f32 %v492_v32, %v1077_v36  ;;  %729 = vrsqrt.f32 %v414_v41  ;;  %v369_v63 = vmul.f32 %v337_v61, %v337_v61  ;;  %v509_v14 = vadd.f32 %v493_v45, %v1073_v34  ;;  %v1910_v45 = vld [vmem:[#allocation14_spill] sm:$0xff] }
  0xe3   : > { %v457_v25 = vadd.f32 0.995, %v441_v1  ;;  %731 = vrsqrt.f32 %v415_v57  ;;  %v495_v3 = vmul.f32 %v335_v4, %v1249_v59  ;;  %v1529_v5 = vadd.f32 %v368_v24, %v1106_v48  ;;  %v1912_v57 = vld [vmem:[#allocation27_spill] sm:$0xff] }
  0xe4   : > { %v722_v0 = vpop.eup %721  ;;  %v1532_v36 = vadd.f32 %v494_v19, %v1093_v43  ;;  %v1535_v58 = vadd.f32 %v369_v63, %v1097_v44  ;;  %v316_v34 = vsel %vm311_vm12, %v300_v46, %v1524_v53  ;;  %v317_v48 = vsel %vm311_vm12, %v298_v54, %v300_v46  ;;  %v1914_v63 = vld [vmem:[#allocation33_spill] sm:$0xff] }
  0xe5   : > { %v724_v11 = vpop.eup %723  ;;  %v521_v52 = vmul.f32 %v505_v55, %v457_v25  ;;  %v442_v31 = vmul.f32 0.005, %v722_v0  ;;  %vm400_vm6 = vcmp.gt.f32.partialorder %v1529_v5, 0.0  ;;  %v1902_v59 = vand.u32 1, %v1236_v27  ;;  %v1908_v55 = vld [vmem:[#allocation25_spill] sm:$0xff]  ;;  %v1578_v1 = vpop.permute.xlu1 %305  ;;  %v1913_v25 = vld [vmem:[#allocation19_spill] sm:$0xff] }
  0xe6   : > { %v443_v49 = vmul.f32 0.005, %v724_v11  ;;  %v1905_v43 = vand.u32 1, %v1252_v60  ;;  %vm401_vm9 = vcmp.gt.f32.partialorder %v1535_v58, 0.0  ;;  %v416_v27 = vsel %vm400_vm6, %v1529_v5, 1.0  ;;  %v304_v16 = vpop.permute.xlu0 %303  ;;  %v1915_v0 = vld [vmem:[#allocation28_spill] sm:$0xff] }
  0xe7   : > { %vm1545_vm7 = vcmp.eq.s32.totalorder %v1902_v59, 0  ;;  %v537_v62 = vsel %vm393_vm15, %v521_v52, %v1908_v55  ;;  %v458_v4 = vadd.f32 0.995, %v442_v31  ;;  %v417_v33 = vsel %vm401_vm9, %v1535_v58, 1.0  ;;  %v1916_v11 = vld [vmem:[#allocation17_spill] sm:$0xff]  ;;  %v1938_v58 = vld [vmem:[#allocation18_spill] sm:$0xff] }
  0xe8   : > { %vm1551_vm8 = vcmp.eq.s32.totalorder %v1905_v43, 0  ;;  %553 = vst [vmem:[%s1564_s26 + $0x8] sm:$0xff] %v537_v62  ;;  %v459_v60 = vadd.f32 0.995, %v443_v49  ;;  %733 = vrsqrt.f32 %v416_v27  ;;  %v338_v20 = vsel %vm1227_vm10, %v1400_v38, %v317_v48  ;;  %v1911_v38 = vld [vmem:[#allocation30_spill] sm:$0xff] }
  0xe9   : > { %v726_v35 = vpop.eup %725  ;;  %v522_v54 = vmul.f32 %v1481_v22, %v458_v4  ;;  %735 = vrsqrt.f32 %v417_v33  ;;  %v339_v26 = vsel %vm1231_vm11, %v1423_v15, %v316_v34  ;;  %v370_v13 = vmul.f32 %v338_v20, %v338_v20 }
  0xea   : > { %v728_v32 = vpop.eup %727  ;;  %v523_v30 = vmul.f32 %v507_v42, %v459_v60  ;;  %v444_v23 = vmul.f32 0.005, %v726_v35  ;;  %v511_v19 = vadd.f32 %v495_v3, %v1910_v45  ;;  %v371_v18 = vmul.f32 %v339_v26, %v339_v26  ;;  %v1922_v35 = vld [vmem:[#allocation36_spill] sm:$0xff] }
  0xeb   : > { %v538_v22 = vsel %vm394_vm1, %v522_v54, %v1911_v38  ;;  %v445_v41 = vmul.f32 0.005, %v728_v32  ;;  %v496_v24 = vmul.f32 %v336_v39, %v1912_v57  ;;  %v1585_v15 = vadd.f32 %v370_v13, %v1913_v25  ;;  %v1917_v39 = vld [vmem:[#allocation31_spill] sm:$0xff]  ;;  %v1926_v57 = vld [vmem:[#allocation37_spill] sm:$0xff]  ;;  %v1927_v25 = vld [vmem:[#allocation22_spill] sm:$0xff] }
  0xec   : > { %v539_v42 = vsel %vm395_vm2, %v523_v30, %v1914_v63  ;;  %554 = vst [vmem:[%s1564_s26 + $0x10] sm:$0xff] %v538_v22  ;;  %v460_v46 = vadd.f32 0.995, %v444_v23  ;;  %v497_v3 = vmul.f32 %v337_v61, %v1915_v0  ;;  %v1593_v52 = vadd.f32 %v371_v18, %v1916_v11  ;;  %v730_v31 = vpop.eup %729  ;;  %v1923_v30 = vld [vmem:[#allocation16_spill] sm:$0xff]  ;;  %v1924_v38 = vld [vmem:[#allocation15_spill] sm:$0xff] }
  0xed   : > { %555 = vst [vmem:[%s1564_s26 + $0x18] sm:$0xff] %v539_v42  ;;  %v461_v12 = vadd.f32 0.995, %v445_v41  ;;  %vm402_vm10 = vcmp.gt.f32.partialorder %v1585_v15, 0.0  ;;  %v498_v49 = vmul.f32 %v338_v20, %v1917_v39  ;;  %v314_v34 = vsel %vm311_vm12, %v304_v16, %v1578_v1  ;;  %v732_v8 = vpop.eup %731  ;;  %v310_v20 = vpop.permute.xlu1 %309  ;;  %v1925_v22 = vld [vmem:[#allocation35_spill] sm:$0xff]  ;;  %v1928_v42 = vld [vmem:[#allocation21_spill] sm:$0xff] }
  0xee   : > { %v524_v48 = vmul.f32 %v508_v29, %v460_v46  ;;  %v446_v59 = vmul.f32 0.005, %v730_v31  ;;  %vm403_vm15 = vcmp.gt.f32.partialorder %v1593_v52, 0.0  ;;  %v418_v61 = vsel %vm402_vm10, %v1585_v15, 1.0  ;;  %v1921_v29 = vld [vmem:[#allocation34_spill] sm:$0xff]  ;;  %v1930_v31 = vld [vmem:[#allocation20_spill] sm:$0xff]  ;;  %v308_v39 = vpop.permute.xlu0 %307 }
  0xef   : > { %v525_v43 = vmul.f32 %v509_v14, %v461_v12  ;;  %v447_v55 = vmul.f32 0.005, %v732_v8  ;;  %v419_v62 = vsel %vm403_vm15, %v1593_v52, 1.0  ;;  %737 = vrsqrt.f32 %v418_v61 }
  0xf0   : > { %v1918_v4 = vand.u32 1, %v1266_v51  ;;  %v540_v60 = vsel %vm396_vm0, %v524_v48, %v1921_v29  ;;  %v462_v33 = vadd.f32 0.995, %v446_v59  ;;  %739 = vrsqrt.f32 %v419_v62 }
  0xf1   : > { %v315_v14 = vsel %vm311_vm12, %v1524_v53, %v304_v16  ;;  %v541_v54 = vsel %vm397_vm3, %v525_v43, %v1922_v35  ;;  %556 = vst [vmem:[%s1564_s26 + $0x20] sm:$0xff] %v540_v60  ;;  %v463_v51 = vadd.f32 0.995, %v447_v55  ;;  %v1632_v21 = vsel %vm1551_vm8, %v1466_v50, %v314_v34  ;;  %v1931_v34 = vld [vmem:[#allocation11_spill] sm:$0xff]  ;;  %v1935_v35 = vld [vmem:[#allocation13_spill] sm:$0xff] }
  0xf2   : > { %vm1610_vm1 = vcmp.eq.s32.totalorder %v1918_v4, 0  ;;  %v1627_v13 = vsel %vm1545_vm7, %v1417_v6, %v315_v14  ;;  %v734_v32 = vpop.eup %733  ;;  %557 = vst [vmem:[%s1564_s26 + $0x28] sm:$0xff] %v541_v54  ;;  %v526_v53 = vmul.f32 %v1532_v36, %v462_v33  ;;  %v512_v37 = vadd.f32 %v496_v24, %v1923_v30  ;;  %v1932_v55 = vld [vmem:[#allocation39_spill] sm:$0xff]  ;;  %v1933_v4 = vld [vmem:[#allocation12_spill] sm:$0xff] }
  0xf3   : > { %v372_v23 = vmul.f32 %v1627_v13, %v1627_v13  ;;  %v373_v45 = vmul.f32 %v1632_v21, %v1632_v21  ;;  %v736_v6 = vpop.eup %735  ;;  %v527_v18 = vmul.f32 %v511_v19, %v463_v51  ;;  %v448_v16 = vmul.f32 0.005, %v734_v32  ;;  %v1934_v14 = vld [vmem:[#allocation40_spill] sm:$0xff]  ;;  %v1936_v32 = vld [vmem:[#allocation43_spill] sm:$0xff] }
  0xf4   : > { %v513_v50 = vadd.f32 %v497_v3, %v1924_v38  ;;  %v327_v41 = vsel %vm311_vm12, %v310_v20, %v1925_v22  ;;  %v542_v36 = vsel %vm398_vm4, %v526_v53, %v1926_v57  ;;  %v449_v24 = vmul.f32 0.005, %v736_v6  ;;  %v1929_v3 = vld [vmem:[#allocation32_spill] sm:$0xff] }
  0xf5   : > { %v1649_v63 = vadd.f32 %v372_v23, %v1927_v25  ;;  %v1652_v46 = vadd.f32 %v373_v45, %v1928_v42  ;;  %v543_v19 = vsel %vm399_vm5, %v527_v18, %v1329_v2  ;;  %558 = vst [vmem:[%s1564_s26 + $0x30] sm:$0xff] %v542_v36  ;;  %v464_v0 = vadd.f32 0.995, %v448_v16  ;;  %v1940_v16 = vld [vmem:[#allocation42_spill] sm:$0xff] }
  0xf6   : > { %v499_v11 = vmul.f32 %v339_v26, %v1929_v3  ;;  %v514_v12 = vadd.f32 %v498_v49, %v1930_v31  ;;  %559 = vst [vmem:[%s1564_s26 + $0x38] sm:$0xff] %v543_v19  ;;  %v465_v7 = vadd.f32 0.995, %v449_v24  ;;  %v328_v8 = vsel %vm1298_vm13, %v1931_v34, %v327_v41  ;;  %v1943_v24 = vld [vmem:[#allocation24_spill] sm:$0xff]  ;;  %v1946_v31 = vld [vmem:[#allocation41_spill] sm:$0xff] }
  0xf7   : > { %vm404_vm2 = vcmp.gt.f32.partialorder %v1649_v63, 0.0  ;;  %vm405_vm0 = vcmp.gt.f32.partialorder %v1652_v46, 0.0  ;;  %v528_v10 = vmul.f32 %v512_v37, %v464_v0  ;;  %v360_v49 = vmul.f32 %v328_v8, %v328_v8  ;;  %v1944_v0 = vld [vmem:[#allocation23_spill] sm:$0xff] }
  0xf8   : > { %v420_v2 = vsel %vm404_vm2, %v1649_v63, 1.0  ;;  %v421_v26 = vsel %vm405_vm0, %v1652_v46, 1.0  ;;  %v529_v48 = vmul.f32 %v513_v50, %v465_v7  ;;  %v488_v59 = vmul.f32 %v328_v8, %v1347_v28 }
  0xf9   : > { %741 = vrsqrt.f32 %v420_v2  ;;  %v312_v61 = vsel %vm311_vm12, %v308_v39, %v310_v20  ;;  %v738_v43 = vpop.eup %737  ;;  %v544_v62 = vsel %vm400_vm6, %v528_v10, %v1932_v55  ;;  %v1679_v29 = vadd.f32 %v360_v49, %v1933_v4  ;;  %v1947_v2 = vld [vmem:[#allocation8_spill] sm:$0xff] }
  0xfa   : > { %743 = vrsqrt.f32 %v421_v26  ;;  %v313_v60 = vsel %vm311_vm12, %v1578_v1, %v308_v39  ;;  %v740_v33 = vpop.eup %739  ;;  %v545_v28 = vsel %vm401_vm9, %v529_v48, %v1934_v14  ;;  %560 = vst [vmem:[%s1564_s26 + $0x40] sm:$0xff] %v544_v62  ;;  %v450_v20 = vmul.f32 0.005, %v738_v43 }
  0xfb   : > { %v504_v54 = vadd.f32 %v488_v59, %v1935_v35  ;;  %v342_v5 = vsel %vm1610_vm1, %v1436_v47, %v313_v60  ;;  %561 = vst [vmem:[%s1564_s26 + $0x48] sm:$0xff] %v545_v28  ;;  %v451_v51 = vmul.f32 0.005, %v740_v33  ;;  %vm392_vm3 = vcmp.gt.f32.partialorder %v1679_v29, 0.0  ;;  %v1939_v47 = vld [vmem:[#allocation29_spill] sm:$0xff] }
  0xfc   : > { %v343_v1 = vsel %vm1315_vm14, %v1936_v32, %v312_v61  ;;  %v374_v53 = vmul.f32 %v342_v5, %v342_v5  ;;  %v466_v30 = vadd.f32 0.995, %v450_v20  ;;  %v515_v37 = vadd.f32 %v499_v11, %v1938_v58  ;;  %v1945_v11 = vld [vmem:[#allocation9_spill] sm:$0xff] }
  0xfd   : > { %v408_v23 = vsel %vm392_vm3, %v1679_v29, 1.0  ;;  %v375_v45 = vmul.f32 %v343_v1, %v343_v1  ;;  %v467_v6 = vadd.f32 0.995, %v451_v51  ;;  %v503_v38 = vmul.f32 %v343_v1, %v1940_v16 }
  0xfe   : > { %745 = vrsqrt.f32 %v408_v23  ;;  %v1702_v18 = vadd.f32 %v374_v53, %v1939_v47  ;;  %v1941_v50 = vmov 4.2499487e-05   ;;  %v530_v41 = vmul.f32 %v514_v12, %v466_v30 }
  0xff   : > { %v225_v22 = vsel %vm1231_vm11, 0.004999819, %v1941_v50  ;;  %v1942_v57 = vmov 0.008499898   ;;  %v391_v25 = vadd.f32 %v375_v45, %v1943_v24  ;;  %v531_v42 = vmul.f32 %v515_v37, %v467_v6 }
 0x100   : > { %v210_v36 = vsel %vm1545_vm7, -0.008499898, %v1942_v57  ;;  %v211_v19 = vsel %vm1551_vm8, -0.008499898, %v1942_v57  ;;  %vm406_vm12 = vcmp.gt.f32.partialorder %v1702_v18, 0.0  ;;  %v519_v3 = vadd.f32 %v503_v38, %v1944_v0 }
 0x101   : > { %v484_v9 = vmul.f32 0.9999639, %v1945_v11  ;;  %v546_v12 = vsel %vm402_vm10, %v530_v41, %v1946_v31  ;;  %vm407_vm11 = vcmp.gt.f32.partialorder %v391_v25, 0.0  ;;  %v422_v39 = vsel %vm406_vm12, %v1702_v18, 1.0 }
 0x102   : > { %v547_v7 = vsel %vm403_vm15, %v531_v42, %v225_v22  ;;  %562 = vst [vmem:[%s1564_s26 + $0x50] sm:$0xff] %v546_v12  ;;  %v500_v34 = vmul.f32 %v1627_v13, %v210_v36  ;;  %v423_v8 = vsel %vm407_vm11, %v391_v25, 1.0  ;;  %747 = vrsqrt.f32 %v422_v39 }
 0x103   : > { %v742_v10 = vpop.eup %741  ;;  %v485_v26 = vmul.f32 0.9999639, %v1947_v2  ;;  %563 = vst [vmem:[%s1564_s26 + $0x58] sm:$0xff] %v547_v7  ;;  %v501_v15 = vmul.f32 %v1632_v21, %v211_v19  ;;  %749 = vrsqrt.f32 %v423_v8  ;;  %v226_v13 = vsel %vm1545_vm7, 0.004999819, %v1941_v50 }
 0x104   : > { %v744_v49 = vpop.eup %743  ;;  %v452_v48 = vmul.f32 0.005, %v742_v10  ;;  %v516_v52 = vadd.f32 %v500_v34, %v484_v9  ;;  %v227_v4 = vsel %vm1551_vm8, 0.004999819, %v1941_v50  ;;  %v212_v60 = vsel %vm1610_vm1, -0.008499898, %v1942_v57 }
 0x105   : > { %v453_v59 = vmul.f32 0.005, %v744_v49  ;;  %v517_v55 = vadd.f32 %v501_v15, %v485_v26  ;;  %v486_v20 = vmul.f32 0.9999639, %v1948_v56  ;;  %v502_v51 = vmul.f32 %v342_v5, %v212_v60 }
 0x106   : > { %v468_v61 = vadd.f32 0.995, %v452_v48  ;;  %v214_v1 = vsel %vm1298_vm13, 0.004999819, %v1941_v50  ;;  %v228_v5 = vsel %vm1610_vm1, 0.004999819, %v1941_v50 }
 0x107   : > { %v469_v43 = vadd.f32 0.995, %v453_v59  ;;  %v518_v23 = vadd.f32 %v502_v51, %v486_v20 }
 0x108   : > { %v746_v62 = vpop.eup %745  ;;  %v532_v21 = vmul.f32 %v516_v52, %v468_v61 }
 0x109   : > { %v533_v33 = vmul.f32 %v517_v55, %v469_v43  ;;  %v440_v14 = vmul.f32 0.005, %v746_v62 }
 0x10a   : > { %v548_v28 = vsel %vm404_vm2, %v532_v21, %v226_v13 }
 0x10b   : > { %v549_v35 = vsel %vm405_vm0, %v533_v33, %v227_v4  ;;  %564 = vst [vmem:[%s1564_s26 + $0x60] sm:$0xff] %v548_v28  ;;  %v456_v44 = vadd.f32 0.995, %v440_v14 }
 0x10c   : > { %v748_v32 = vpop.eup %747  ;;  %565 = vst [vmem:[%s1564_s26 + $0x68] sm:$0xff] %v549_v35 }
 0x10d   : > { %v750_v53 = vpop.eup %749  ;;  %v520_v63 = vmul.f32 %v504_v54, %v456_v44  ;;  %v454_v30 = vmul.f32 0.005, %v748_v32  ;;  %v229_v54 = vsel %vm1315_vm14, 0.004999819, %v1941_v50 }
 0x10e   : > { %v455_v58 = vmul.f32 0.005, %v750_v53 }
 0x10f   : > { %v536_v46 = vsel %vm392_vm3, %v520_v63, %v214_v1  ;;  %v470_v37 = vadd.f32 0.995, %v454_v30 }
 0x110   : > { %552 = vst [vmem:[%s1564_s26] sm:$0xff] %v536_v46  ;;  %v471_v40 = vadd.f32 0.995, %v455_v58 }
 0x111   : > { %v534_v29 = vmul.f32 %v518_v23, %v470_v37 }
 0x112   : > { %v535_v45 = vmul.f32 %v519_v3, %v471_v40 }
 0x113   : > { %v550_v6 = vsel %vm406_vm12, %v534_v29, %v228_v5 }
 0x114   : > { %v551_v27 = vsel %vm407_vm11, %v535_v45, %v229_v54  ;;  %566 = vst [vmem:[%s1564_s26 + $0x70] sm:$0xff] %v550_v6 }
 0x115   : > { %567 = vst [vmem:[%s1564_s26 + $0x78] sm:$0xff] %v551_v27 }
 0x116   : > { %794 = shalt.err (!%p791_p4)
}
 0x117   : > { %s795_s13 = scalar_lea.hbm %s1767_s2, 2048  ;;  %s799_s20 = scalar_lea.hbm %s1815_s1, 4096 }
 0x118   : > { %p796_p5 = scmp.ne.s32.totalorder %s1767_s2, %s795_s13  ;;  %p800_p0 = scmp.lt.u32.totalorder %s1767_s2, %s1815_s1 }
 0x119   : > { %p801_p1 = scmp.lt.u32.totalorder %s799_s20, %s795_s13  ;;  %p803_p6 = scmp.lt.u32.totalorder %s795_s13, %s1767_s2 }
 0x11a   : > { %p797_p8 = pnand %p796_p5, %p1949_p11 }
 0x11b   : > { %p802_p3 = por %p801_p1, %p800_p0 }
 0x11c   : > { %p798_p9 = pneg %p797_p8 }
 0x11d   : > { %p804_p12 = por %p803_p6, %p802_p3 }
 0x11f   : > { %p805_p13 = pnand %p804_p12, %p798_p9 }
 0x121   : > { %808 = shalt.err (!%p805_p13)
}
 0x122   : > { %671 = dma.vmem_to_hbm [thread:$0]  (%p1949_p11), %s1769_s28, 2048, %s1767_s2, %s569_s10  }
 0x123 PF: > { %s595_s23 = sand.u32 1, %s835_s6   ;;  %p1950_p7 = scmp.ne.s32.totalorder %s1834_s19, 0 }
 0x124   : > { %p1951_p10 = scmp.ge.s32.totalorder %s847_s9, 2  ;;  %s596_s24 = scalar_lea.sflag [#allocation4], %s595_s23 }
 0x126   : > { %p678_p2 = pnand %p1951_p10, %p1950_p7 }
 0x128   : > { %830 = dma.done.wait (!%p678_p2), %s596_s24, 2048  }
 0x129   : > { %832 = vsyncadd (!%p678_p2), %s596_s24, 4294965248  ;;  %p14_p4 = scmp.ge.s32.totalorder %s890_s12, 4   ;;  %s1952_s6 = smov %s839_s7 }
 0x12a   : > { %s1953_s7 = smov %s843_s8  ;;  %s1954_s8 = smov %s902_s15 }
 0x12b   : > { %s1955_s9 = smov %s890_s12  ;;  %16 = sbr.rel (!%p14_p4) target bundleno = 5 (0x5), region = 69 }
 0x132   :  { %601 = vsyncpa [#allocation3], 1 }
 0x133   :  { %603 = vsyncpa [#allocation3 + $0x1], 1 }
 0x134   :  { %604 = vsyncpa [#allocation4], 1 }
 0x135   :  { %606 = vsyncpa [#allocation4 + $0x1], 1 }

</bundles_post_ra>
